<compile_context>
chip_gen: v7x
topology: tpu7x:2x2x1
jax: 0.10.0
libtpu: 0.0.40
codegen_flags: <defaults>
</compile_context>

<pallas_src>
import functools
import math

import jax
import jax.numpy as jnp
from jax.experimental import pallas as pl
from jax.experimental.pallas import tpu as pltpu

HUMAN_DIM = 23 * 6 + 9   # 147
H1_DIM = 19 + 9          # 28
_EPS = 1e-8              # F.cosine_similarity per-norm clamp


def _round_up(x, m):
  return ((x + m - 1) // m) * m


def _cdiv(a, b):
  return (a + b - 1) // b


# --------------------------------------------------------------------------
# Kernel 1: streaming encoders / decoders / masked MSE partial sums.
# Grid (core_split, steps): axis 0 is "parallel" (v7x megacore split), axis 1
# streams row tiles.  Latents are emitted to HBM; MSE partial sums accumulate
# in a per-core resident output block.
# --------------------------------------------------------------------------
def _stream_kernel(human_ref, rr_ref,
                   w_ea_ref, b_ea_ref, w_eb_ref, b_eb_ref,
                   w_da_ref, b_da_ref, w_db_ref, b_db_ref,
                   la_ref, lt_ref, mse_ref,
                   *, nb, tm, steps):
  f32 = jnp.float32
  c = pl.program_id(0)
  s = pl.program_id(1)

  @pl.when(s == 0)
  def _init():
    mse_ref[...] = jnp.zeros_like(mse_ref)

  cdt = w_ea_ref.dtype                                   # matmul compute dtype
  x_h = human_ref[...]                                   # (tm, 147), caller dtype
  rr = rr_ref[...]                                       # (2, tm, 28)
  rr2 = rr.reshape(2 * tm, rr.shape[-1])                 # (2tm, 28)

  # ---- encoders (MXU, f32 accumulation); enc_B shared over both streams ----
  l_a = jnp.dot(x_h.astype(cdt), w_ea_ref[...],
                preferred_element_type=f32) + b_ea_ref[...]          # (tm, lat)
  l_rr = jnp.dot(rr2.astype(cdt), w_eb_ref[...],
                 preferred_element_type=f32) + b_eb_ref[...]         # (2tm, lat)

  la_ref[...] = l_a.astype(la_ref.dtype)
  lt_ref[...] = l_rr[:tm].astype(lt_ref.dtype)

  # ---- decoders (dec_B shared) + masked per-row squared errors -------------
  h_rec = jnp.dot(l_a.astype(cdt), w_da_ref[...],
                  preferred_element_type=f32) + b_da_ref[...]        # (tm, 147)
  rr_rec = jnp.dot(l_rr.astype(cdt), w_db_ref[...],
                   preferred_element_type=f32) + b_db_ref[...]       # (2tm, 28)

  t = c * steps + s                                      # global row-tile index
  r_iota = jax.lax.broadcasted_iota(jnp.int32, (tm, 1), 0)
  valid = (t * tm + r_iota) < nb                         # (tm, 1), kills pad rows

  d_h = h_rec - x_h.astype(f32)                          # exact f32 MSE target
  sq_h = jnp.sum(d_h * d_h, axis=1, keepdims=True)       # (tm, 1)
  d_rr = rr_rec - rr2.astype(f32)
  sq_rr = jnp.sum(d_rr * d_rr, axis=1, keepdims=True)    # (2tm, 1)

  s_h = jnp.sum(jnp.where(valid, sq_h, 0.0), axis=0, keepdims=True)        # (1,1)
  s_t = jnp.sum(jnp.where(valid, sq_rr[:tm], 0.0), axis=0, keepdims=True)  # (1,1)
  s_0 = jnp.sum(jnp.where(valid, sq_rr[tm:], 0.0), axis=0, keepdims=True)  # (1,1)

  lane = jax.lax.broadcasted_iota(jnp.int32, (1, 1, 128), 2)
  mse_ref[...] += (jnp.where(lane == 0, s_h, 0.0)
                   + jnp.where(lane == 1, s_t, 0.0)
                   + jnp.where(lane == 2, s_0, 0.0))


# --------------------------------------------------------------------------
# Kernel 2: NxN cosine similarity + symmetric cross-entropy + loss packing.
# --------------------------------------------------------------------------
def _finalize_kernel(la_ref, lt_ref, msep_ref, logit_scale_ref, out_ref,
                     *, n, b, nb):
  f32 = jnp.float32
  la = la_ref[...].astype(f32)
  lt = lt_ref[...].astype(f32)
  if la.shape[0] != nb:                     # static slice: drop pad/dup rows
    la = la[:nb]
    lt = lt[:nb]
  lat = la.shape[-1]
  a3 = la.reshape(n, b, lat)                # a3[i, j] = L_A[i, j]
  t3 = lt.reshape(b, n, lat)                # t3[i, j] = L_T[j, i] (batch-major rows)

  # logits = exp(logit_scale) * cos(L_A, L_T.permute(1,0,2))
  num = jnp.sum(a3 * t3, axis=-1)                         # (n, n)
  na = jnp.sqrt(jnp.sum(a3 * a3, axis=-1))
  nt = jnp.sqrt(jnp.sum(t3 * t3, axis=-1))
  denom = jnp.maximum(na, _EPS) * jnp.maximum(nt, _EPS)
  scale = jnp.exp(logit_scale_ref[0])                     # SMEM scalar
  logits = scale * num / denom                            # exact divide (n,n)

  rows = jax.lax.broadcasted_iota(jnp.int32, (n, n), 0)
  cols = jax.lax.broadcasted_iota(jnp.int32, (n, n), 1)
  diag = rows == cols
  # trace of logits shared by both CE terms (labels = arange -> diagonal).
  trace = jnp.sum(jnp.sum(jnp.where(diag, logits, 0.0), axis=1, keepdims=True),
                  axis=0, keepdims=True)                  # (1, 1)

  m_r = jnp.max(logits, axis=1, keepdims=True)
  lse_r = m_r + jnp.log(jnp.sum(jnp.exp(logits - m_r), axis=1, keepdims=True))
  loss_a_ce = (jnp.sum(lse_r, axis=0, keepdims=True) - trace) / float(n)

  m_c = jnp.max(logits, axis=0, keepdims=True)
  lse_c = m_c + jnp.log(jnp.sum(jnp.exp(logits - m_c), axis=0, keepdims=True))
  loss_t_ce = (jnp.sum(lse_c, axis=1, keepdims=True) - trace) / float(n)

  mse = jnp.sum(msep_ref[...], axis=0)                    # (1, 128): sum over cores
  s_h = mse[:, 0:1]
  s_t = mse[:, 1:2]
  s_0 = mse[:, 2:3]

  lane = jax.lax.broadcasted_iota(jnp.int32, (8, 128), 1)
  out_ref[...] = (jnp.where(lane == 0, loss_a_ce, 0.0)
                  + jnp.where(lane == 1, loss_t_ce, 0.0)
                  + jnp.where(lane == 2, s_h * (1.0 / (nb * HUMAN_DIM)), 0.0)
                  + jnp.where(lane == 3, s_t * (1.0 / (nb * H1_DIM)), 0.0)
                  + jnp.where(lane == 4, s_0 * (1.0 / (nb * H1_DIM)), 0.0))


def contrastive_forward(params, human, retarget, recycle, *,
                        row_tile=1024, compute_dtype=jnp.bfloat16,
                        core_split=2):
  """Returns (loss_A_ce, loss_T_ce, loss_A_re, loss_T_re, loss_0_re) f32 scalars."""
  n, b, hdim = human.shape
  assert hdim == HUMAN_DIM
  assert retarget.shape == (n, b, H1_DIM) and recycle.shape == (n, b, H1_DIM)
  assert n == b, "cosine_similarity broadcast in the reference requires nframes == batch"
  nb = n * b
  lat = params["w_ea"].shape[1]
  cdt = compute_dtype
  f32 = jnp.float32

  core_split = max(1, int(core_split))
  tm = _round_up(max(1, min(row_tile, max(nb // core_split, 1))), 8)
  in_tiles = _cdiv(nb, tm)
  steps = _cdiv(in_tiles, core_split)          # steps per core
  r_rows = core_split * steps * tm             # latent output rows (>= nb)
  last_tile = in_tiles - 1                     # input index clamp target

  # Activations keep the caller's dtype (bf16 cast happens in-kernel); only the
  # cheap 28-wide transpose/stack is done in XLA -- no 147/28 -> 256/128 pad.
  human_k = human.reshape(nb, HUMAN_DIM)
  rr_k = jnp.stack(
      [jnp.transpose(retarget, (1, 0, 2)).reshape(nb, H1_DIM),
       recycle.reshape(nb, H1_DIM)], axis=0)                       # (2, nb, 28)

  w_ea = params["w_ea"].astype(cdt)            # (147, lat)
  w_eb = params["w_eb"].astype(cdt)            # (28, lat)
  w_da = params["w_da"].astype(cdt)            # (lat, 147)
  w_db = params["w_db"].astype(cdt)            # (lat, 28)
  b_ea = params["b_ea"].astype(f32).reshape(1, lat)
  b_eb = params["b_eb"].astype(f32).reshape(1, lat)
  b_da = params["b_da"].astype(f32).reshape(1, HUMAN_DIM)
  b_db = params["b_db"].astype(f32).reshape(1, H1_DIM)
  logit_scale = params["logit_scale"].astype(f32).reshape(1)

  # ---- derived VMEM budgets (review: derive, don't hard-code) --------------
  lane = lambda v: _round_up(v, 128)
  sub = lambda v: _round_up(v, 8)
  act_isz = jnp.dtype(human.dtype).itemsize
  c_isz = jnp.dtype(cdt).itemsize
  tile_bytes = (tm * lane(HUMAN_DIM) * act_isz
                + 2 * tm * lane(H1_DIM) * act_isz
                + 2 * tm * lane(lat) * c_isz)
  weight_bytes = ((sub(HUMAN_DIM) + sub(H1_DIM)) * lane(lat)
                  + sub(lat) * (lane(HUMAN_DIM) + lane(H1_DIM))) * c_isz
  temp_bytes = tm * (3 * lane(lat) + 2 * lane(HUMAN_DIM) + 4 * lane(H1_DIM)) * 4
  vmem1 = int(min(60 << 20,
                  max(20 << 20,
                      2 * (tile_bytes + weight_bytes) + temp_bytes + (4 << 20))))

  stash_bytes = 2 * r_rows * lane(lat) * c_isz
  fin_tmp = 4 * sub(nb) * lane(lat) * 4 + 8 * sub(n) * lane(n) * 4
  vmem2 = int(min(60 << 20, max(16 << 20, 2 * stash_bytes + fin_tmp + (4 << 20))))
  # TODO(synk): tile the finalize over latent rows if 2*nb*lat bytes ever
  # approaches v7x's 64 MiB physical VMEM (very large nframes*batch).

  def _row_map(c, s):
    return (jnp.minimum(c * steps + s, last_tile), 0)

  def _rr_map(c, s):
    return (0, jnp.minimum(c * steps + s, last_tile), 0)

  def _const(shape):
    return pl.BlockSpec(shape, lambda c, s, _sh=shape: (0,) * len(_sh))

  stream = pl.pallas_call(
      functools.partial(_stream_kernel, nb=nb, tm=tm, steps=steps),
      out_shape=(jax.ShapeDtypeStruct((r_rows, lat), cdt),            # L_A
                 jax.ShapeDtypeStruct((r_rows, lat), cdt),            # L_T (batch-major)
                 jax.ShapeDtypeStruct((core_split, 1, 128), f32)),    # MSE partials
      grid_spec=pltpu.PrefetchScalarGridSpec(
          num_scalar_prefetch=0,
          grid=(core_split, steps),
          in_specs=[
              pl.BlockSpec((tm, HUMAN_DIM), _row_map),
              pl.BlockSpec((2, tm, H1_DIM), _rr_map),
              _const((HUMAN_DIM, lat)), _const((1, lat)),          # enc_A
              _const((H1_DIM, lat)), _const((1, lat)),             # enc_B
              _const((lat, HUMAN_DIM)), _const((1, HUMAN_DIM)),    # dec_A
              _const((lat, H1_DIM)), _const((1, H1_DIM)),          # dec_B
          ],
          out_specs=[
              pl.BlockSpec((tm, lat), lambda c, s: (c * steps + s, 0)),
              pl.BlockSpec((tm, lat), lambda c, s: (c * steps + s, 0)),
              pl.BlockSpec((1, 1, 128), lambda c, s: (c, 0, 0)),
          ]),
      compiler_params=pltpu.CompilerParams(
          dimension_semantics=("parallel", "arbitrary"),
          vmem_limit_bytes=vmem1),
  )
  lat_a, lat_t, mse_part = stream(human_k, rr_k, w_ea, b_ea, w_eb, b_eb,
                                  w_da, b_da, w_db, b_db)

  finalize = pl.pallas_call(
      functools.partial(_finalize_kernel, n=n, b=b, nb=nb),
      out_shape=jax.ShapeDtypeStruct((8, 128), f32),
      grid_spec=pltpu.PrefetchScalarGridSpec(
          num_scalar_prefetch=0,
          grid=(1,),
          in_specs=[
              pl.BlockSpec((r_rows, lat), lambda i: (0, 0)),
              pl.BlockSpec((r_rows, lat), lambda i: (0, 0)),
              pl.BlockSpec((core_split, 1, 128), lambda i: (0, 0, 0)),
              pl.BlockSpec(memory_space=pltpu.MemorySpace.SMEM),    # logit_scale
          ],
          out_specs=pl.BlockSpec((8, 128), lambda i: (0, 0))),
      compiler_params=pltpu.CompilerParams(
          dimension_semantics=("arbitrary",),
          vmem_limit_bytes=vmem2),
  )
  out = finalize(lat_a, lat_t, mse_part, logit_scale)
  return tuple(out[0, k] for k in range(5))


def init_params(key, latent_dim=32):
  """Deterministic synthetic parameters mirroring the module's __init__ shapes."""
  def linear(k, fin, fout):
    kw, kb = jax.random.split(k)
    bound = 1.0 / math.sqrt(fin)  # PyTorch nn.Linear default init range
    w = jax.random.uniform(kw, (fin, fout), jnp.float32, -bound, bound)
    bv = jax.random.uniform(kb, (1, fout), jnp.float32, -bound, bound)
    return w, bv

  k = jax.random.split(key, 4)
  w_ea, b_ea = linear(k[0], HUMAN_DIM, latent_dim)   # enc_A.poseEmbedding
  w_eb, b_eb = linear(k[1], H1_DIM, latent_dim)      # enc_B.poseEmbedding
  w_da, b_da = linear(k[2], latent_dim, HUMAN_DIM)   # dec_A.poseFinal
  w_db, b_db = linear(k[3], latent_dim, H1_DIM)      # dec_B.poseFinal
  logit_scale = jnp.full((1, 1), math.log(1.0 / 0.07), jnp.float32)
  return dict(w_ea=w_ea, b_ea=b_ea, w_eb=w_eb, b_eb=b_eb,
              w_da=w_da, b_da=b_da, w_db=w_db, b_db=b_db,
              logit_scale=logit_scale)


if __name__ == "__main__":
  key = jax.random.PRNGKey(0)
  kp, kh, kr, kc = jax.random.split(key, 4)

  N = B = 8                 # nframes == batch (required by the reference broadcast)
  LATENT = 32               # small latent_dim for the synthetic smoke test

  params = init_params(kp, latent_dim=LATENT)
  human = jax.random.normal(kh, (N, B, HUMAN_DIM), jnp.float32)
  retarget = jax.random.normal(kr, (N, B, H1_DIM), jnp.float32)
  recycle = jax.random.normal(kc, (N, B, H1_DIM), jnp.float32)

  # Default config: one row tile per core (grid (2, 1)).
  losses = contrastive_forward(params, human, retarget, recycle)
  jax.block_until_ready(losses)

  # Small row tile -> multi-step accumulate/finalize path (grid (2, 2)).
  losses2 = contrastive_forward(params, human, retarget, recycle, row_tile=16)
  jax.block_until_ready(losses2)

  print("KERNEL_OK")
</pallas_src>

<mosaic_0001>
module attributes {stable_mosaic.version = 11 : i64} {
  func.func @_stream_kernel(%arg0: i32, %arg1: i32, %arg2: memref<32x147xf32, #tpu.memory_space<vmem>>, %arg3: memref<2x32x28xf32, #tpu.memory_space<vmem>>, %arg4: memref<147x32xbf16, #tpu.memory_space<vmem>>, %arg5: memref<1x32xf32, #tpu.memory_space<vmem>>, %arg6: memref<28x32xbf16, #tpu.memory_space<vmem>>, %arg7: memref<1x32xf32, #tpu.memory_space<vmem>>, %arg8: memref<32x147xbf16, #tpu.memory_space<vmem>>, %arg9: memref<1x147xf32, #tpu.memory_space<vmem>>, %arg10: memref<32x28xbf16, #tpu.memory_space<vmem>>, %arg11: memref<1x28xf32, #tpu.memory_space<vmem>>, %arg12: memref<32x32xbf16, #tpu.memory_space<vmem>>, %arg13: memref<32x32xbf16, #tpu.memory_space<vmem>>, %arg14: memref<1x1x128xf32, #tpu.memory_space<vmem>>) attributes {dimension_semantics = [#tpu.dimension_semantics<parallel>, #tpu.dimension_semantics<arbitrary>], iteration_bounds = array<i64: 2, 1>, scalar_prefetch = 0 : i64, scratch_operands = 0 : i64, tpu.core_type = #tpu.core_type<tc>, window_params = [{transform_indices = @transform_0, window_bounds = array<i64: 32, 147>}, {transform_indices = @transform_1, window_bounds = array<i64: 2, 32, 28>}, {pipeline_mode = #tpu.pipeline_mode<synchronous>, transform_indices = @transform_2, window_bounds = array<i64: 147, 32>}, {pipeline_mode = #tpu.pipeline_mode<synchronous>, transform_indices = @transform_3, window_bounds = array<i64: 1, 32>}, {pipeline_mode = #tpu.pipeline_mode<synchronous>, transform_indices = @transform_4, window_bounds = array<i64: 28, 32>}, {pipeline_mode = #tpu.pipeline_mode<synchronous>, transform_indices = @transform_5, window_bounds = array<i64: 1, 32>}, {pipeline_mode = #tpu.pipeline_mode<synchronous>, transform_indices = @transform_6, window_bounds = array<i64: 32, 147>}, {pipeline_mode = #tpu.pipeline_mode<synchronous>, transform_indices = @transform_7, window_bounds = array<i64: 1, 147>}, {pipeline_mode = #tpu.pipeline_mode<synchronous>, transform_indices = @transform_8, window_bounds = array<i64: 32, 28>}, {pipeline_mode = #tpu.pipeline_mode<synchronous>, transform_indices = @transform_9, window_bounds = array<i64: 1, 28>}, {transform_indices = @transform_10, window_bounds = array<i64: 32, 32>}, {transform_indices = @transform_11, window_bounds = array<i64: 32, 32>}, {transform_indices = @transform_12, window_bounds = array<i64: 1, 1, 128>}]} {
    %c0_i32 = arith.constant 0 : i32
    %0 = arith.cmpi eq, %arg1, %c0_i32 : i32
    %1 = arith.extui %0 : i1 to i32
    %c0_i32_0 = arith.constant 0 : i32
    %2 = arith.cmpi ne, %1, %c0_i32_0 : i32
    scf.if %2 {
      %cst_47 = arith.constant 0.000000e+00 : f32
      %89 = vector.broadcast %cst_47 : f32 to vector<1x1x128xf32>
      %c0_48 = arith.constant 0 : index
      %c0_49 = arith.constant 0 : index
      %c0_50 = arith.constant 0 : index
      %90 = vector.load %arg14[%c0_48, %c0_49, %c0_50] : memref<1x1x128xf32, #tpu.memory_space<vmem>>, vector<1x1x128xf32>
      tpu.vector_store %arg14[%c0_48, %c0_49, %c0_50], %89 {strides = array<i32>} : memref<1x1x128xf32, #tpu.memory_space<vmem>>, vector<1x1x128xf32>,
    } else {
    }
    %c0 = arith.constant 0 : index
    %c0_1 = arith.constant 0 : index
    %3 = vector.load %arg2[%c0, %c0_1] : memref<32x147xf32, #tpu.memory_space<vmem>>, vector<32x147xf32>
    %c0_2 = arith.constant 0 : index
    %c0_3 = arith.constant 0 : index
    %c0_4 = arith.constant 0 : index
    %4 = vector.load %arg3[%c0_2, %c0_3, %c0_4] : memref<2x32x28xf32, #tpu.memory_space<vmem>>, vector<2x32x28xf32>
    %5 = vector.shape_cast %4 : vector<2x32x28xf32> to vector<64x28xf32>
    %6 = arith.truncf %3 : vector<32x147xf32> to vector<32x147xbf16>
    %c0_5 = arith.constant 0 : index
    %c0_6 = arith.constant 0 : index
    %7 = vector.load %arg4[%c0_5, %c0_6] : memref<147x32xbf16, #tpu.memory_space<vmem>>, vector<147x32xbf16>
    %cst = arith.constant dense<0.000000e+00> : vector<32x32xf32>
    %8 = tpu.matmul %6, %7, %cst {dimension_numbers = #tpu.dot_dimension_numbers<[1], [0], [0], [1], [0, 0, 1, 1], [], []>} : vector<32x147xbf16>, vector<147x32xbf16>, vector<32x32xf32> -> vector<32x32xf32>
    %c0_7 = arith.constant 0 : index
    %c0_8 = arith.constant 0 : index
    %9 = vector.load %arg5[%c0_7, %c0_8] : memref<1x32xf32, #tpu.memory_space<vmem>>, vector<1x32xf32>
    %10 = vector.broadcast %9 : vector<1x32xf32> to vector<32x32xf32>
    %11 = arith.addf %8, %10 : vector<32x32xf32>
    %12 = arith.truncf %5 : vector<64x28xf32> to vector<64x28xbf16>
    %c0_9 = arith.constant 0 : index
    %c0_10 = arith.constant 0 : index
    %13 = vector.load %arg6[%c0_9, %c0_10] : memref<28x32xbf16, #tpu.memory_space<vmem>>, vector<28x32xbf16>
    %cst_11 = arith.constant dense<0.000000e+00> : vector<64x32xf32>
    %14 = tpu.matmul %12, %13, %cst_11 {dimension_numbers = #tpu.dot_dimension_numbers<[1], [0], [0], [1], [0, 0, 1, 1], [], []>} : vector<64x28xbf16>, vector<28x32xbf16>, vector<64x32xf32> -> vector<64x32xf32>
    %c0_12 = arith.constant 0 : index
    %c0_13 = arith.constant 0 : index
    %15 = vector.load %arg7[%c0_12, %c0_13] : memref<1x32xf32, #tpu.memory_space<vmem>>, vector<1x32xf32>
    %16 = vector.broadcast %15 : vector<1x32xf32> to vector<64x32xf32>
    %17 = arith.addf %14, %16 : vector<64x32xf32>
    %18 = arith.truncf %11 : vector<32x32xf32> to vector<32x32xbf16>
    %c0_14 = arith.constant 0 : index
    %c0_15 = arith.constant 0 : index
    %19 = vector.load %arg12[%c0_14, %c0_15] : memref<32x32xbf16, #tpu.memory_space<vmem>>, vector<32x32xbf16>
    tpu.vector_store %arg12[%c0_14, %c0_15], %18 {strides = array<i32>} : memref<32x32xbf16, #tpu.memory_space<vmem>>, vector<32x32xbf16>,
    %20 = vector.extract_strided_slice %17 {offsets = [0, 0], sizes = [32, 32], strides = [1, 1]} : vector<64x32xf32> to vector<32x32xf32>
    %21 = arith.truncf %20 : vector<32x32xf32> to vector<32x32xbf16>
    %c0_16 = arith.constant 0 : index
    %c0_17 = arith.constant 0 : index
    %22 = vector.load %arg13[%c0_16, %c0_17] : memref<32x32xbf16, #tpu.memory_space<vmem>>, vector<32x32xbf16>
    tpu.vector_store %arg13[%c0_16, %c0_17], %21 {strides = array<i32>} : memref<32x32xbf16, #tpu.memory_space<vmem>>, vector<32x32xbf16>,
    %23 = arith.truncf %11 : vector<32x32xf32> to vector<32x32xbf16>
    %c0_18 = arith.constant 0 : index
    %c0_19 = arith.constant 0 : index
    %24 = vector.load %arg8[%c0_18, %c0_19] : memref<32x147xbf16, #tpu.memory_space<vmem>>, vector<32x147xbf16>
    %cst_20 = arith.constant dense<0.000000e+00> : vector<32x147xf32>
    %25 = tpu.matmul %23, %24, %cst_20 {dimension_numbers = #tpu.dot_dimension_numbers<[1], [0], [0], [1], [0, 0, 1, 1], [], []>} : vector<32x32xbf16>, vector<32x147xbf16>, vector<32x147xf32> -> vector<32x147xf32>
    %c0_21 = arith.constant 0 : index
    %c0_22 = arith.constant 0 : index
    %26 = vector.load %arg9[%c0_21, %c0_22] : memref<1x147xf32, #tpu.memory_space<vmem>>, vector<1x147xf32>
    %27 = vector.broadcast %26 : vector<1x147xf32> to vector<32x147xf32>
    %28 = arith.addf %25, %27 : vector<32x147xf32>
    %29 = arith.truncf %17 : vector<64x32xf32> to vector<64x32xbf16>
    %c0_23 = arith.constant 0 : index
    %c0_24 = arith.constant 0 : index
    %30 = vector.load %arg10[%c0_23, %c0_24] : memref<32x28xbf16, #tpu.memory_space<vmem>>, vector<32x28xbf16>
    %cst_25 = arith.constant dense<0.000000e+00> : vector<64x28xf32>
    %31 = tpu.matmul %29, %30, %cst_25 {dimension_numbers = #tpu.dot_dimension_numbers<[1], [0], [0], [1], [0, 0, 1, 1], [], []>} : vector<64x32xbf16>, vector<32x28xbf16>, vector<64x28xf32> -> vector<64x28xf32>
    %c0_26 = arith.constant 0 : index
    %c0_27 = arith.constant 0 : index
    %32 = vector.load %arg11[%c0_26, %c0_27] : memref<1x28xf32, #tpu.memory_space<vmem>>, vector<1x28xf32>
    %33 = vector.broadcast %32 : vector<1x28xf32> to vector<64x28xf32>
    %34 = arith.addf %31, %33 : vector<64x28xf32>
    %c1_i32 = arith.constant 1 : i32
    %35 = arith.muli %arg0, %c1_i32 : i32
    %36 = arith.addi %35, %arg1 : i32
    %37 = tpu.iota {dimensions = array<i32: 0>} : vector<32x1xi32>
    %c32_i32 = arith.constant 32 : i32
    %38 = arith.muli %36, %c32_i32 : i32
    %39 = vector.broadcast %38 : i32 to vector<32x1xi32>
    %40 = arith.addi %39, %37 : vector<32x1xi32>
    %c64_i32 = arith.constant 64 : i32
    %41 = vector.broadcast %c64_i32 : i32 to vector<32x1xi32>
    %42 = arith.cmpi slt, %40, %41 : vector<32x1xi32>
    %43 = arith.subf %28, %3 : vector<32x147xf32>
    %44 = arith.mulf %43, %43 : vector<32x147xf32>
    %cst_28 = arith.constant dense<0.000000e+00> : vector<32xf32>
    %45 = vector.multi_reduction <add>, %44, %cst_28 [1] : vector<32x147xf32> to vector<32xf32>
    %46 = vector.shape_cast %45 : vector<32xf32> to vector<32x1xf32>
    %47 = arith.subf %34, %5 : vector<64x28xf32>
    %48 = arith.mulf %47, %47 : vector<64x28xf32>
    %cst_29 = arith.constant dense<0.000000e+00> : vector<64xf32>
    %49 = vector.multi_reduction <add>, %48, %cst_29 [1] : vector<64x28xf32> to vector<64xf32>
    %50 = vector.shape_cast %49 : vector<64xf32> to vector<64x1xf32>
    %cst_30 = arith.constant 0.000000e+00 : f32
    %51 = vector.broadcast %cst_30 : f32 to vector<32x1xf32>
    %52 = arith.select %42, %46, %51 : vector<32x1xi1>, vector<32x1xf32>
    %cst_31 = arith.constant dense<0.000000e+00> : vector<1xf32>
    %53 = vector.multi_reduction <add>, %52, %cst_31 [0] : vector<32x1xf32> to vector<1xf32>
    %54 = vector.shape_cast %53 : vector<1xf32> to vector<1x1xf32>
    %55 = vector.extract_strided_slice %50 {offsets = [0, 0], sizes = [32, 1], strides = [1, 1]} : vector<64x1xf32> to vector<32x1xf32>
    %cst_32 = arith.constant 0.000000e+00 : f32
    %56 = vector.broadcast %cst_32 : f32 to vector<32x1xf32>
    %57 = arith.select %42, %55, %56 : vector<32x1xi1>, vector<32x1xf32>
    %cst_33 = arith.constant dense<0.000000e+00> : vector<1xf32>
    %58 = vector.multi_reduction <add>, %57, %cst_33 [0] : vector<32x1xf32> to vector<1xf32>
    %59 = vector.shape_cast %58 : vector<1xf32> to vector<1x1xf32>
    %60 = vector.extract_strided_slice %50 {offsets = [32, 0], sizes = [32, 1], strides = [1, 1]} : vector<64x1xf32> to vector<32x1xf32>
    %cst_34 = arith.constant 0.000000e+00 : f32
    %61 = vector.broadcast %cst_34 : f32 to vector<32x1xf32>
    %62 = arith.select %42, %60, %61 : vector<32x1xi1>, vector<32x1xf32>
    %cst_35 = arith.constant dense<0.000000e+00> : vector<1xf32>
    %63 = vector.multi_reduction <add>, %62, %cst_35 [0] : vector<32x1xf32> to vector<1xf32>
    %64 = vector.shape_cast %63 : vector<1xf32> to vector<1x1xf32>
    %65 = tpu.iota {dimensions = array<i32: 2>} : vector<1x1x128xi32>
    %c0_36 = arith.constant 0 : index
    %c0_37 = arith.constant 0 : index
    %c0_38 = arith.constant 0 : index
    %66 = vector.load %arg14[%c0_36, %c0_37, %c0_38] : memref<1x1x128xf32, #tpu.memory_space<vmem>>, vector<1x1x128xf32>
    %c0_i32_39 = arith.constant 0 : i32
    %67 = vector.broadcast %c0_i32_39 : i32 to vector<1x1x128xi32>
    %68 = arith.cmpi eq, %65, %67 : vector<1x1x128xi32>
    %cst_40 = arith.constant 0.000000e+00 : f32
    %69 = vector.shape_cast %54 : vector<1x1xf32> to vector<1x1x1xf32>
    %70 = vector.broadcast %69 : vector<1x1x1xf32> to vector<1x1x128xf32>
    %71 = vector.broadcast %cst_40 : f32 to vector<1x1x128xf32>
    %72 = arith.select %68, %70, %71 : vector<1x1x128xi1>, vector<1x1x128xf32>
    %c1_i32_41 = arith.constant 1 : i32
    %73 = vector.broadcast %c1_i32_41 : i32 to vector<1x1x128xi32>
    %74 = arith.cmpi eq, %65, %73 : vector<1x1x128xi32>
    %cst_42 = arith.constant 0.000000e+00 : f32
    %75 = vector.shape_cast %59 : vector<1x1xf32> to vector<1x1x1xf32>
    %76 = vector.broadcast %75 : vector<1x1x1xf32> to vector<1x1x128xf32>
    %77 = vector.broadcast %cst_42 : f32 to vector<1x1x128xf32>
    %78 = arith.select %74, %76, %77 : vector<1x1x128xi1>, vector<1x1x128xf32>
    %79 = arith.addf %72, %78 : vector<1x1x128xf32>
    %c2_i32 = arith.constant 2 : i32
    %80 = vector.broadcast %c2_i32 : i32 to vector<1x1x128xi32>
    %81 = arith.cmpi eq, %65, %80 : vector<1x1x128xi32>
    %cst_43 = arith.constant 0.000000e+00 : f32
    %82 = vector.shape_cast %64 : vector<1x1xf32> to vector<1x1x1xf32>
    %83 = vector.broadcast %82 : vector<1x1x1xf32> to vector<1x1x128xf32>
    %84 = vector.broadcast %cst_43 : f32 to vector<1x1x128xf32>
    %85 = arith.select %81, %83, %84 : vector<1x1x128xi1>, vector<1x1x128xf32>
    %86 = arith.addf %79, %85 : vector<1x1x128xf32>
    %87 = arith.addf %66, %86 : vector<1x1x128xf32>
    %c0_44 = arith.constant 0 : index
    %c0_45 = arith.constant 0 : index
    %c0_46 = arith.constant 0 : index
    %88 = vector.load %arg14[%c0_44, %c0_45, %c0_46] : memref<1x1x128xf32, #tpu.memory_space<vmem>>, vector<1x1x128xf32>
    tpu.vector_store %arg14[%c0_44, %c0_45, %c0_46], %87 {strides = array<i32>} : memref<1x1x128xf32, #tpu.memory_space<vmem>>, vector<1x1x128xf32>,
    return
  }
  func.func @transform_0(%arg0: i32, %arg1: i32) -> (i32, i32) {
    %c1_i32 = arith.constant 1 : i32
    %0 = arith.muli %arg0, %c1_i32 : i32
    %1 = arith.addi %0, %arg1 : i32
    %c1_i32_0 = arith.constant 1 : i32
    %2 = arith.minsi %1, %c1_i32_0 : i32
    %c0_i32 = arith.constant 0 : i32
    %c0_i32_1 = arith.constant 0 : i32
    return %2, %c0_i32 : i32, i32
  }
  func.func @transform_1(%arg0: i32, %arg1: i32) -> (i32, i32, i32) {
    %c1_i32 = arith.constant 1 : i32
    %0 = arith.muli %arg0, %c1_i32 : i32
    %1 = arith.addi %0, %arg1 : i32
    %c1_i32_0 = arith.constant 1 : i32
    %2 = arith.minsi %1, %c1_i32_0 : i32
    %c0_i32 = arith.constant 0 : i32
    %c0_i32_1 = arith.constant 0 : i32
    %c0_i32_2 = arith.constant 0 : i32
    return %c0_i32, %2, %c0_i32_1 : i32, i32, i32
  }
  func.func @transform_2(%arg0: i32, %arg1: i32) -> (i32, i32) {
    %c0_i32 = arith.constant 0 : i32
    %c0_i32_0 = arith.constant 0 : i32
    %c0_i32_1 = arith.constant 0 : i32
    return %c0_i32, %c0_i32_0 : i32, i32
  }
  func.func @transform_3(%arg0: i32, %arg1: i32) -> (i32, i32) {
    %c0_i32 = arith.constant 0 : i32
    %c0_i32_0 = arith.constant 0 : i32
    %c0_i32_1 = arith.constant 0 : i32
    return %c0_i32, %c0_i32_0 : i32, i32
  }
  func.func @transform_4(%arg0: i32, %arg1: i32) -> (i32, i32) {
    %c0_i32 = arith.constant 0 : i32
    %c0_i32_0 = arith.constant 0 : i32
    %c0_i32_1 = arith.constant 0 : i32
    return %c0_i32, %c0_i32_0 : i32, i32
  }
  func.func @transform_5(%arg0: i32, %arg1: i32) -> (i32, i32) {
    %c0_i32 = arith.constant 0 : i32
    %c0_i32_0 = arith.constant 0 : i32
    %c0_i32_1 = arith.constant 0 : i32
    return %c0_i32, %c0_i32_0 : i32, i32
  }
  func.func @transform_6(%arg0: i32, %arg1: i32) -> (i32, i32) {
    %c0_i32 = arith.constant 0 : i32
    %c0_i32_0 = arith.constant 0 : i32
    %c0_i32_1 = arith.constant 0 : i32
    return %c0_i32, %c0_i32_0 : i32, i32
  }
  func.func @transform_7(%arg0: i32, %arg1: i32) -> (i32, i32) {
    %c0_i32 = arith.constant 0 : i32
    %c0_i32_0 = arith.constant 0 : i32
    %c0_i32_1 = arith.constant 0 : i32
    return %c0_i32, %c0_i32_0 : i32, i32
  }
  func.func @transform_8(%arg0: i32, %arg1: i32) -> (i32, i32) {
    %c0_i32 = arith.constant 0 : i32
    %c0_i32_0 = arith.constant 0 : i32
    %c0_i32_1 = arith.constant 0 : i32
    return %c0_i32, %c0_i32_0 : i32, i32
  }
  func.func @transform_9(%arg0: i32, %arg1: i32) -> (i32, i32) {
    %c0_i32 = arith.constant 0 : i32
    %c0_i32_0 = arith.constant 0 : i32
    %c0_i32_1 = arith.constant 0 : i32
    return %c0_i32, %c0_i32_0 : i32, i32
  }
  func.func @transform_10(%arg0: i32, %arg1: i32) -> (i32, i32) {
    %c1_i32 = arith.constant 1 : i32
    %0 = arith.muli %arg0, %c1_i32 : i32
    %1 = arith.addi %0, %arg1 : i32
    %c0_i32 = arith.constant 0 : i32
    %c0_i32_0 = arith.constant 0 : i32
    return %1, %c0_i32 : i32, i32
  }
  func.func @transform_11(%arg0: i32, %arg1: i32) -> (i32, i32) {
    %c1_i32 = arith.constant 1 : i32
    %0 = arith.muli %arg0, %c1_i32 : i32
    %1 = arith.addi %0, %arg1 : i32
    %c0_i32 = arith.constant 0 : i32
    %c0_i32_0 = arith.constant 0 : i32
    return %1, %c0_i32 : i32, i32
  }
  func.func @transform_12(%arg0: i32, %arg1: i32) -> (i32, i32, i32) {
    %c0_i32 = arith.constant 0 : i32
    %c0_i32_0 = arith.constant 0 : i32
    %c0_i32_1 = arith.constant 0 : i32
    return %arg0, %c0_i32, %c0_i32_0 : i32, i32, i32
  }
}

</mosaic_0001>

<bundles_post_ra>
// kernel: tpu_custom_call.1
= control target key start
LH: loop header
LB: loop body
LE: loop exit
PB: predicated region body
PF: predicated region fallthrough
CT: control target
= control target key end

     0   :  { %s2166_s0 = inlined_call_operand.vmem [shape: f32[64,147], index: 0, kind: input, shape index: {}]   ;;  %s2167_s1 = inlined_call_operand.vmem [shape: f32[2,64,28], index: 1, kind: input, shape index: {}]   ;;  %s2168_s2 = inlined_call_operand.vmem [shape: bf16[147,32], index: 2, kind: input, shape index: {}]   ;;  %s2169_s3 = inlined_call_operand.vmem [shape: f32[1,32], index: 3, kind: input, shape index: {}]   ;;  %s2170_s4 = inlined_call_operand.vmem [shape: bf16[28,32], index: 4, kind: input, shape index: {}]   ;;  %s2171_s5 = inlined_call_operand.vmem [shape: f32[1,32], index: 5, kind: input, shape index: {}]   ;;  %s2172_s6 = inlined_call_operand.vmem [shape: bf16[32,147], index: 6, kind: input, shape index: {}]   ;;  %s2173_s7 = inlined_call_operand.vmem [shape: f32[1,147], index: 7, kind: input, shape index: {}]   ;;  %s2174_s8 = inlined_call_operand.vmem [shape: bf16[32,28], index: 8, kind: input, shape index: {}]   ;;  %s2175_s9 = inlined_call_operand.vmem [shape: f32[1,28], index: 9, kind: input, shape index: {}]   ;;  %s2176_s10 = inlined_call_operand.vmem [shape: bf16[64,32], index: 10, kind: output, shape index: {0}]   ;;  %s2177_s11 = inlined_call_operand.vmem [shape: bf16[64,32], index: 11, kind: output, shape index: {1}]   ;;  %s2178_s12 = inlined_call_operand.hbm [shape: f32[2,1,128], index: 12, kind: output, shape index: {2}]  }
   0x1   :  { %2181 = sst [smem:[#allocation7_spill]] %s2166_s0 }
   0x2   :  { %2182 = sst [smem:[#allocation8_spill]] %s2167_s1 }
   0x3   :  { %2183 = sst [smem:[#allocation9_spill]] %s2173_s7 }
   0x4   :  { %2184 = sst [smem:[#allocation10_spill]] %s2175_s9 }
   0x5   :  { %2185 = sst [smem:[#allocation11_spill]] %s2178_s12 }
   0x6   :  { %18 = vsyncpa [#allocation4], 0 }
   0x7   :  { %20 = vsyncpa [#allocation4 + $0x1], 0  ;;  %s1776_s21 = smov 0   ;;  %s1778_s22 = smov 0  }
   0x8   :  { %s1780_s23 = smov 0   ;;  %s1782_s24 = smov 0  }
   0x9   :  { %s1784_s25 = smov 0   ;;  %s1786_s26 = smov 0  }
   0xa   :  { %s1788_s27 = smov 0   ;;  %s1790_s28 = smov 0  }
   0xb LB: > { %2186 = sst [smem:[#allocation6_spill]] %s1701_s27  ;;  %s1409_s29 = sadd.s32 4294967295, %s1705_s28   ;;  %s1705_s28 = sphi %s1790_s28, %s26_s28   ;;  %s1701_s27 = sphi %s1788_s27, %s2201_s27   ;;  %s1697_s26 = sphi %s1786_s26, %s2195_s26   ;;  %s1693_s25 = sphi %s1784_s25, %s2200_s25   ;;  %s1689_s24 = sphi %s1782_s24, %s2199_s24   ;;  %s1685_s23 = sphi %s1780_s23, %s2198_s23   ;;  %s1681_s22 = sphi %s1778_s22, %s2197_s22   ;;  %s1677_s21 = sphi %s1776_s21, %s2196_s21  }
   0xc   : > { %s1410_s30 = sadd.s32 4294967294, %s1705_s28   ;;  %s38_s13 = sadd.s32 1, %s1701_s27 }
   0xd   : > { %p75_p0 = scmp.lt.s32.totalorder %s1701_s27, 1  ;;  %p40_p1 = scmp.ge.s32.totalorder %s38_s13, 2 }
   0xe   : > { %s83_s14 = sadd.s32 1, %s1693_s25  ;;  %p90_p2 = scmp.ne.s32.totalorder %s1693_s25, %s1689_s24 }
   0xf   : > { %s76_s15 = scalar_select %p75_p0, %s1701_s27, 1 }
  0x10   : > { %s2203_s13 = smov (%p40_p1, %s38_s13), 0  ;;  %p91_p3 = scmp.eq.s32.totalorder %s1705_s28, 0 }
  0x11   : > { %p78_p4 = scmp.lt.s32.totalorder %s2203_s13, 1  ;;  %s330_s16 = ssub.s32 %s1701_s27, %s2203_s13 }
  0x12   : > { %p1830_p5 = por %p91_p3, %p90_p2  ;;  %p331_p6 = scmp.eq.s32.totalorder %s330_s16, 0 }
  0x13   : > { %s79_s18 = scalar_select %p78_p4, %s2203_s13, 1 }
  0x14   : > { %s333_s19 = sadd.s32 1, %s1685_s23  ;;  %p343_p7 = scmp.ne.s32.totalorder %s1685_s23, %s1681_s22 }
  0x15   : > { %s80_s20 = ssub.s32 %s76_s15, %s79_s18  ;;  %p344_p8 = scmp.eq.s32.totalorder %s1409_s29, 1 }
  0x16   : > { %p81_p9 = scmp.eq.s32.totalorder %s80_s20, 0  ;;  %p349_p10 = scmp.ne.s32.totalorder %s1681_s22, %s1677_s21 }
  0x17   : > { %s1841_s12 = scalar_select %p331_p6, %s1685_s23, %s333_s19  }
  0x18   : > { %s1844_s9 = scalar_select %p81_p9, %s1693_s25, %s83_s14  }
  0x19   : > { %p1846_p11 = por %p344_p8, %p343_p7  ;;  %p350_p12 = scmp.eq.s32.totalorder %s1410_s30, 1 }
  0x1a   : > { %p1412_p0 = scmp.ge.s32.totalorder %s1705_s28, 2 }
  0x1b   : > { %p1850_p13 = por %p350_p12, %p349_p10 }
  0x1c   : > { %390 = sbr.rel (%p1412_p0) target bundleno = 49 (0x31), region = 48 }
  0x23   : > { %409 = sbr.rel (!%p1830_p5) target bundleno = 49 (0x31), region = 56  ;;  %s411_s29 = sand.u32 (%p1830_p5), 1, %s1693_s25  }
  0x24   : > { %s1470_s14 = sshll.u32 (%p1830_p5), %s76_s15, 5  ;;  %s1413_s16 = sshll.u32 (%p1830_p5), %s411_s29, 6 }
  0x25   : > { %s2190_s1 = sld [smem:[#allocation8_spill]] (%p1830_p5)  ;;  %s413_s20 = scalar_lea.vmem (%p1830_p5), [#allocation2], %s1413_s16 }
  0x2b   : > { %s419_s30 = scalar_lea.vmem %s2190_s1, %s1470_s14 }
  0x2c   : > { %v461_v0 = vld [vmem:[%s419_s30] sm:$0xff]  ;;  %v463_v1 = vld [vmem:[%s419_s30 + $0x8] sm:$0xff]  ;;  %v465_v2 = vld [vmem:[%s419_s30 + $0x10] sm:$0xff] }
  0x2d   : > { %462 = vst [vmem:[%s413_s20] sm:$0xff] %v461_v0  ;;  %464 = vst [vmem:[%s413_s20 + $0x8] sm:$0xff] %v463_v1  ;;  %v467_v3 = vld [vmem:[%s419_s30 + $0x18] sm:$0xff]  ;;  %v469_v4 = vld [vmem:[%s419_s30 + $0x40] sm:$0xff] }
  0x2e   : > { %466 = vst [vmem:[%s413_s20 + $0x10] sm:$0xff] %v465_v2  ;;  %v471_v5 = vld [vmem:[%s419_s30 + $0x48] sm:$0xff]  ;;  %468 = vst [vmem:[%s413_s20 + $0x18] sm:$0xff] %v467_v3  ;;  %v473_v6 = vld [vmem:[%s419_s30 + $0x50] sm:$0xff] }
  0x2f   : > { %470 = vst [vmem:[%s413_s20 + $0x20] sm:$0xff] %v469_v4  ;;  %472 = vst [vmem:[%s413_s20 + $0x28] sm:$0xff] %v471_v5  ;;  %v475_v7 = vld [vmem:[%s419_s30 + $0x58] sm:$0xff] }
  0x30   : > { %474 = vst [vmem:[%s413_s20 + $0x30] sm:$0xff] %v473_v6  ;;  %476 = vst [vmem:[%s413_s20 + $0x38] sm:$0xff] %v475_v7 }
  0x31 PF: > { %p1416_p1 = scmp.ge.s32.totalorder %s1705_s28, 1  ;;  %p481_p2 = scmp.lt.s32.totalorder %s1705_s28, 3 }
  0x33   : > { %p482_p3 = pnand %p1416_p1, %p481_p2 }
  0x34   : > { %v1591_v8 = vld [vmem:[%s2168_s2] sm:$0xff] (!%p482_p3)   ;;  %v1707_v9 = vmov (!%p482_p3), 0   ;;  %v1592_v10 = vld [vmem:[%s2168_s2 + $0x8] sm:$0xff] (!%p482_p3)   ;;  %v1593_v11 = vld [vmem:[%s2168_s2 + $0x10] sm:$0xff] (!%p482_p3)   ;;  %p550_p4 = scmp.lt.s32.totalorder (!%p482_p3), %s1697_s26, 1  ;;  %vm793_vm0 = vcmask (!%p482_p3), 1045504  }
  0x35   : > { %485 = sbr.rel (%p482_p3) target bundleno = 742 (0x2e6), region = 94  ;;  %705 = vmatprep.subr.bf16.mxu0 (!%p482_p3), %v1707_v9  ;;  %v1594_v12 = vld [vmem:[%s2168_s2 + $0x18] sm:$0xff] (!%p482_p3)   ;;  %v1601_v13 = vld [vmem:[%s2170_s4] sm:$0xff] (!%p482_p3)   ;;  %s488_s14 = sand.u32 (!%p482_p3), 1, %s1689_s24   ;;  %v1602_v14 = vld [vmem:[%s2170_s4 + $0x8] sm:$0x3f] (!%p482_p3)  }
  0x36   : > { %706 = vmatpush1.bf16.msra.mxu0 (!%p482_p3), %v1591_v8  ;;  %1492 = vmatprep.subr.bf16.mxu1 (!%p482_p3), %v1601_v13  ;;  %s1417_s1 = sshll.u32 (!%p482_p3), %s488_s14, 6  ;;  %v1605_v15 = vld [vmem:[%s2172_s6 + $0x4] ss:$8 sps:$4 sm:$0xff] (!%p482_p3)   ;;  %v795_v17 = vsel (!%p482_p3), %vm793_vm0, %v1602_v14, 0  ;;  %vm780_vm1 = vcmask (!%p482_p3), 228352   ;;  %s2191_s0 = sld [smem:[#allocation7_spill]] (!%p482_p3) }
  0x37   : > { %707 = vmatprep.subr.bf16.mxu0 (!%p482_p3), %v1707_v9  ;;  %1493 = vmatpush3.bf16.msra.mxu1 (!%p482_p3), %v1601_v13  ;;  %v1595_v16 = vld [vmem:[%s2168_s2 + $0x20] sm:$0xff] (!%p482_p3)   ;;  %s490_s17 = scalar_lea.vmem (!%p482_p3), [#allocation2], %s1417_s1  ;;  %vm691_vm2 = vcmask (!%p482_p3), 154624   ;;  %v1596_v30 = vld [vmem:[%s2168_s2 + $0x28] sm:$0xff] (!%p482_p3)   ;;  %v1606_v32 = vld [vmem:[%s2172_s6 + $0x10] ss:$8 sps:$4 sm:$0xff] (!%p482_p3)  }
  0x38   : > { %1516 = vmatprep.subr.msk.bf16.mxu1 (!%p482_p3), %vm793_vm0, %v1602_v14  ;;  %v1897_v18 = vld [vmem:[%s490_s17] sm:$0xff] (!%p482_p3)  ;;  %v1899_v19 = vld [vmem:[%s490_s17 + $0x8] sm:$0xff] (!%p482_p3)  ;;  %v1901_v20 = vld [vmem:[%s490_s17 + $0x10] sm:$0xff] (!%p482_p3)  ;;  %vm698_vm3 = vcmask (!%p482_p3), 1040384   ;;  %vm699_vm4 = vcmask (!%p482_p3), 1041408   ;;  %v1708_v39 = vmov (!%p482_p3), 65535  }
  0x39   : > { %v754_v21 = vpack.c.bf16 (!%p482_p3), %v1899_v19, %v1897_v18  ;;  %v1910_v22 = vld [vmem:[%s490_s17 + $0x18] sm:$0xff] (!%p482_p3)  ;;  %v1912_v23 = vld [vmem:[%s490_s17 + $0x20] sm:$0xff] (!%p482_p3)  ;;  %v1914_v24 = vld [vmem:[%s490_s17 + $0x28] sm:$0xff] (!%p482_p3)  ;;  %v700_v40 = vsel (!%p482_p3), %vm698_vm3, 4294967295, %v1708_v39  ;;  %s1421_s16 = sshll.u32 (!%p482_p3), %s1697_s26, 2  ;;  %vm878_vm5 = vcmask (!%p482_p3), 257024  }
  0x3a   : > { %708 = vmatpush1.bf16.msra.mxu0 (!%p482_p3), %v1592_v10  ;;  %v755_v27 = vpack.c.bf16 (!%p482_p3), %v1910_v22, %v1901_v20  ;;  %v756_v28 = vpack.c.bf16 (!%p482_p3), %v1914_v24, %v1912_v23  ;;  %v1603_v29 = vld [vmem:[%s2172_s6] ss:$8 sps:$4 sm:$0xff] (!%p482_p3)   ;;  %v1942_v33 = vld [vmem:[%s490_s17 + $0x30] sm:$0xff] (!%p482_p3)  ;;  %v1944_v34 = vld [vmem:[%s490_s17 + $0x38] sm:$0xff] (!%p482_p3)  ;;  %v701_v43 = vsel (!%p482_p3), %vm699_vm4, %v700_v40, 0  ;;  %p568_p6 = scmp.lt.s32.totalorder (!%p482_p3), %s1421_s16, 7 }
  0x3b   : > { %709 = vmatprep.subr.bf16.mxu0 (!%p482_p3), %v1707_v9  ;;  %1495 = vmatpush3.bf16.msra.mxu1 (!%p482_p3), %v795_v17  ;;  %v1608_v35 = vld [vmem:[%s2172_s6 + $0x14] ss:$8 sps:$4 sm:$0xff] (!%p482_p3)   ;;  %v757_v37 = vpack.c.bf16 (!%p482_p3), %v1944_v34, %v1942_v33  ;;  %v1599_v41 = vld [vmem:[%s2168_s2 + $0x40] sm:$0xff] (!%p482_p3)   ;;  %v1600_v42 = vld [vmem:[%s2168_s2 + $0x48] ss:$0 sps:$4 sm:$0x33] (!%p482_p3)  }
  0x3c   : > { %s551_s19 = scalar_select %p550_p4, %s1697_s26, 1  ;;  %946 = vmatprep.subr.bf16.mxu1 %v1605_v15  ;;  %1496 = vmatprep.mubr.msk.bf16.mxu1 %vm780_vm1, %v754_v21  ;;  %v1597_v36 = vld [vmem:[%s2168_s2 + $0x30] sm:$0xff]   ;;  %v1598_v38 = vld [vmem:[%s2168_s2 + $0x38] sm:$0xff]   ;;  %v703_v44 = vand.u32 %v1600_v42, %v701_v43  ;;  %v1609_v54 = vld [vmem:[%s2174_s8] sm:$0xff]   ;;  %vm939_vm6 = vcmask 261120  }
  0x3d   : > { %s2207_s16 = smov (!%p568_p6, %s1421_s16), 7  ;;  %v1438_v55 = vld [vmem:[%s2171_s5] ss:$0 sm:$0xff]  ;;  %s2192_s30 = sld [smem:[#allocation9_spill]] }
  0x3e   : > { %710 = vmatpush1.bf16.msra.mxu0 %v1593_v11  ;;  %s1418_s29 = sshll.u32 %s551_s19, 2  ;;  %1497 = vmatmul.mubr.msk.bf16.vlgmr.msra.gmra.mrb[0].mxu1 %vm780_vm1, %v755_v27  ;;  %v1425_v17 = vld [vmem:[%s2169_s3] ss:$0 sm:$0xff]  ;;  %s2193_s19 = sld [smem:[#allocation10_spill]] }
  0x3f   : > { %711 = vmatprep.subr.bf16.mxu0 %v1707_v9  ;;  %p553_p5 = scmp.lt.s32.totalorder %s1418_s29, 7  ;;  %1500 = vmatprep.mubr.msk.bf16.mxu1 %vm780_vm1, %v756_v28  ;;  %s1467_s17 = sshll.u32 %s1697_s26, 4 }
  0x40   : > { %947 = vmatpush1.bf16.msra.mxu1 %v1603_v29 }
  0x41   : > { %s2205_s29 = smov (!%p553_p5, %s1418_s29), 7  ;;  %948 = vmatprep.subr.bf16.mxu1 %v1608_v35 }
  0x42   : > { %712 = vmatpush1.bf16.msra.mxu0 %v1594_v12  ;;  %s1471_s24 = sshll.u32 %s2205_s29, 4 }
  0x43   : > { %713 = vmatprep.subr.bf16.mxu0 %v1707_v9  ;;  %s1906_s18 = scalar_lea.vmem %s2191_s0, %s1471_s24  ;;  %s547_s24 = sand.u32 1, %s1681_s22  }
  0x44   : > { %v1917_v25 = vld [vmem:[%s1906_s18 + $0x8] sm:$0xff]  ;;  %v1920_v26 = vld [vmem:[%s1906_s18 + $0x18] sm:$0xff]  ;;  %949 = vmatpush1.bf16.msra.mxu1 %v1606_v32  ;;  %v1969_v45 = vld [vmem:[%s1906_s18] sm:$0xff]  ;;  %s2082_s14 = scalar_lea.vmem [#allocation3], %s547_s24  ;;  %s1254_s15 = scalar_lea.sflag [#allocation4], %s547_s24 }
  0x45   : > { %v605_v31 = vpack.c.bf16 %v1920_v26, %v1917_v25  ;;  %v1972_v46 = vld [vmem:[%s1906_s18 + $0x10] sm:$0xff]  ;;  %v1976_v47 = vld [vmem:[%s1906_s18 + $0x28] sm:$0xff]  ;;  %v1979_v48 = vld [vmem:[%s1906_s18 + $0x38] sm:$0xff]  ;;  %1504 = vmatprep.subr.bf16.mxu1 %v1609_v54  ;;  %s1276_s29 = sshll.u32 %s2082_s14, 4  ;;  %s2111_s29 = int_to_ptr.vmem [resolvable:$true] %s1276_s29 }
  0x46   : > { %714 = vmatpush1.bf16.msra.mxu0 %v1595_v16  ;;  %1501 = vmatmul.mubr.msk.bf16.gmra.mrb[4].mxu1 %vm780_vm1, %v757_v37  ;;  %v604_v49 = vpack.c.bf16 %v1972_v46, %v1969_v45  ;;  %v607_v50 = vpack.c.bf16 %v1979_v48, %v1976_v47  ;;  %v1987_v51 = vld [vmem:[%s1906_s18 + $0x20] sm:$0xff]  ;;  %v1990_v52 = vld [vmem:[%s1906_s18 + $0x30] sm:$0xff]  ;;  %s1422_s18 = sshll.u32 %s2207_s16, 2  ;;  %v1610_v37 = vld [vmem:[%s2174_s8 + $0x8] sm:$0xff]  }
  0x47   : > { %715 = vmatprep.subr.bf16.mxu0 %v1707_v9  ;;  %1436 = vmatprep.mubr.msk.bf16.mxu0 %vm691_vm2, %v605_v31  ;;  %v606_v53 = vpack.c.bf16 %v1990_v52, %v1987_v51  ;;  %s579_s20 = scalar_lea.vmem %s2177_s11, %s1422_s18  ;;  %s571_s1 = scalar_lea.vmem %s2176_s10, %s1422_s18 }
  0x48   : > { %978 = vmatprep.mubr.bf16.mxu1 %v1707_v9 }
  0x4a   : > { %716 = vmatpush1.bf16.msra.mxu0 %v1596_v30 }
  0x4b   : > { %717 = vmatprep.subr.bf16.mxu0 %v1707_v9 }
  0x4e   : > { %718 = vmatpush1.bf16.msra.mxu0 %v1597_v36 }
  0x4f   : > { %719 = vmatprep.subr.bf16.mxu0 %v1707_v9 }
  0x52   : > { %720 = vmatpush1.bf16.msra.mxu0 %v1598_v38 }
  0x53   : > { %721 = vmatprep.subr.bf16.mxu0 %v1707_v9 }
  0x56   : > { %722 = vmatpush1.bf16.msra.mxu0 %v1599_v41 }
  0x57   : > { %723 = vmatprep.subr.bf16.mxu0 %v1707_v9 }
  0x5a   : > { %724 = vmatpush1.bf16.msra.mxu0 %v703_v44 }
  0x5d   : > { %738 = vmatmul.mubr.bf16.vlgmr.msra.gmra.mrb[0].mxu0 %v604_v49 }
  0x5e   : > { %1437 = vmatprep.mubr.msk.bf16.mxu0 %vm691_vm2, %v607_v50 }
  0x65   : > { %746 = vmatmul.mubr.bf16.gmra.mrb[4].mxu0 %v606_v53 }
 0x111   : > { %v1498_v56 = vpop.f32.mrb[0].mxu1 }
 0x112   : > { %v2003_v57 = vadd.f32 %v1498_v56, %v1438_v55  ;;  %v831_v58 = vpop.f32.mrb[1].mxu1 }
 0x113   : > { %v832_v59 = vadd.f32 %v1438_v55, %v831_v58  ;;  %v1499_v60 = vpop.f32.mrb[2].mxu1 }
 0x114   : > { %v843_v61 = vadd.f32 %v1499_v60, %v1438_v55  ;;  %v834_v62 = vpop.f32.mrb[3].mxu1  ;;  %v1478_v1 = vpack.c.bf16 %v2003_v57, %v2003_v57 }
 0x115   : > { %v1476_v63 = vpack.c.bf16 %v832_v59, %v832_v59  ;;  %v835_v0 = vadd.f32 %v1438_v55, %v834_v62 }
 0x116   : > { %v884_v2 = vpack.c.bf16 %v843_v61, %v2003_v57  ;;  %v1479_v3 = vpack.c.bf16 %v843_v61, %v843_v61  ;;  %901 = vst.msk [vmem:[%s579_s20 + $0x8] sm:$0xf] %vm878_vm5, %v1478_v1 }
 0x117   : > { %899 = vst.msk [vmem:[%s579_s20] sm:$0xf] %vm878_vm5, %v1476_v63  ;;  %v883_v4 = vpack.c.bf16 %v835_v0, %v832_v59  ;;  %v1477_v5 = vpack.c.bf16 %v835_v0, %v835_v0 }
 0x118   : > { %902 = vst.msk [vmem:[%s579_s20 + $0xc] sm:$0xf] %vm878_vm5, %v1479_v3 }
 0x119   : > { %900 = vst.msk [vmem:[%s579_s20 + $0x4] sm:$0xf] %vm878_vm5, %v1477_v5  ;;  %v1502_v6 = vpop.f32.mrb[4].mxu1 }
 0x11a   : > { %v856_v7 = vadd.f32 %v1502_v6, %v1438_v55  ;;  %v847_v8 = vpop.f32.mrb[5].mxu1 }
 0x11b   : > { %v848_v10 = vadd.f32 %v1438_v55, %v847_v8  ;;  %v1503_v11 = vpop.f32.mrb[6].mxu1 }
 0x11c   : > { %v859_v12 = vadd.f32 %v1503_v11, %v1438_v55  ;;  %v850_v13 = vpop.f32.mrb[7].mxu1 }
 0x11d   : > { %v851_v14 = vadd.f32 %v1438_v55, %v850_v13  ;;  %v907_v55 = vld [vmem:[%s2192_s30] sm:$0x3]  ;;  %s2194_s30 = sld [smem:[#allocation11_spill]] }
 0x11e   : > { %v1000_v15 = vpack.c.bf16 %v859_v12, %v856_v7 }
 0x11f   : > { %v999_v16 = vpack.c.bf16 %v851_v14, %v848_v10 }
 0x123   : > { %s2109_s20 = scalar_lea.hbm %s2194_s30, %s1467_s17 }
 0x130   : > { %v739_v21 = vpop.f32.mrb[0].mxu0 }
 0x131   : > { %v740_v27 = vadd.f32 %v1425_v17, %v739_v21  ;;  %v741_v28 = vpop.f32.mrb[1].mxu0 }
 0x132   : > { %v742_v29 = vpop.f32.mrb[2].mxu0 }
 0x133   : > { %v1472_v30 = vpack.c.bf16 %v740_v27, %v740_v27  ;;  %v743_v31 = vadd.f32 %v1425_v17, %v742_v29  ;;  %v744_v32 = vpop.f32.mrb[3].mxu0 }
 0x135   : > { %879 = vst.msk [vmem:[%s571_s1] sm:$0xf] %vm878_vm5, %v1472_v30  ;;  %v862_v35 = vpack.c.bf16 %v743_v31, %v740_v27  ;;  %v1473_v36 = vpack.c.bf16 %v743_v31, %v743_v31 }
 0x137   : > { %880 = vst.msk [vmem:[%s571_s1 + $0x4] sm:$0xf] %vm878_vm5, %v1473_v36  ;;  %1457 = vmatmul.mubr.msk.bf16.vlgmr.msra.gmra.mrb[8].mxu1 %vm939_vm6, %v862_v35  ;;  %v1459_v35 = vld [vmem:[%s2193_s19] ss:$0 sm:$0xff]  ;;  %s1611_s19 = scalar_lea.vmem %s2111_s29, 16 }
 0x138   : > { %1505 = vmatpush3.bf16.msra.mxu1 %v1609_v54  ;;  %v747_v38 = vpop.f32.mrb[4].mxu0  ;;  %988 = vmatprep.mubr.bf16.mxu1 %v1707_v9  ;;  %v909_v9 = vlaneseq  ;;  %p1612_p7 = scmp.ne.s32.totalorder %s2111_s29, %s1611_s19 }
 0x139   : > { %v748_v39 = vadd.f32 %v1425_v17, %v747_v38  ;;  %v749_v40 = vpop.f32.mrb[5].mxu0  ;;  %1506 = vmatprep.subr.bf16.mxu1 %v1610_v37 }
 0x13a   : > { %v750_v41 = vpop.f32.mrb[6].mxu0  ;;  %v2041_v53 = vshrl.u32 %v909_v9, 7  ;;  %p1613_p8 = pnand %p1612_p7, %p1846_p11 }
 0x13b   : > { %v1474_v42 = vpack.c.bf16 %v748_v39, %v748_v39  ;;  %v751_v43 = vadd.f32 %v1425_v17, %v750_v41  ;;  %v752_v44 = vpop.f32.mrb[7].mxu0 }
 0x13c   : > { %1507 = vmatpush3.bf16.msra.mxu1 %v1610_v37  ;;  %v911_v54 = vsub.s32 0, %v2041_v53  ;;  %v915_v56 = vsub.s32 1, %v2041_v53  ;;  %p1614_p9 = pneg %p1613_p8 }
 0x13d   : > { %881 = vst.msk [vmem:[%s571_s1 + $0x8] sm:$0xf] %vm878_vm5, %v1474_v42  ;;  %v863_v49 = vpack.c.bf16 %v751_v43, %v748_v39  ;;  %v1475_v50 = vpack.c.bf16 %v751_v43, %v751_v43 }
 0x13e   : > { %v912_v57 = vrot.slane %v907_v55, %v911_v54  ;;  %v916_v58 = vrot.slane %v907_v55, %v915_v56 }
 0x13f   : > { %882 = vst.msk [vmem:[%s571_s1 + $0xc] sm:$0xf] %vm878_vm5, %v1475_v50  ;;  %1458 = vmatmul.mubr.msk.bf16.gmra.mrb[12].mxu1 %vm939_vm6, %v863_v49  ;;  %s1466_s1 = sshll.u32 %s1697_s26, 5  ;;  %s1710_s26 = smov [#allocation3]  }
 0x140   : > { %1508 = vmatprep.mubr.msk.bf16.mxu1 %vm939_vm6, %v883_v4 }
 0x147   : > { %1509 = vmatmul.mubr.msk.bf16.vlgmr.msra.gmra.mrb[16].mxu1 %vm939_vm6, %v884_v2 }
 0x148   : > { %1512 = vmatprep.mubr.msk.bf16.mxu1 %vm939_vm6, %v999_v16 }
 0x14f   : > { %1513 = vmatmul.mubr.msk.bf16.gmra.mrb[20].mxu1 %vm939_vm6, %v1000_v15 }
 0x20a   : > { %v980_v59 = vpop.f32.mrb[8].mxu1 }
 0x20b   : > { %v981_v60 = vadd.f32 %v980_v59, %v912_v57  ;;  %v982_v61 = vpop.f32.mrb[9].mxu1 }
 0x20c   : > { %v983_v62 = vadd.f32 %v982_v61, %v916_v58  ;;  %v984_v63 = vpop.f32.mrb[10].mxu1 }
 0x20d   : > { %v985_v0 = vadd.f32 %v984_v63, %v912_v57  ;;  %v986_v1 = vpop.f32.mrb[11].mxu1  ;;  %v1117_v2 = vsub.f32 %v981_v60, %v1969_v45 }
 0x20e   : > { %v1118_v3 = vsub.f32 %v983_v62, %v1917_v25  ;;  %v987_v4 = vadd.f32 %v986_v1, %v916_v58 }
 0x20f   : > { %v1119_v5 = vsub.f32 %v985_v0, %v1972_v46  ;;  %v1125_v8 = vmul.f32 %v1117_v2, %v1117_v2 }
 0x210   : > { %v1120_v6 = vsub.f32 %v987_v4, %v1920_v26  ;;  %v1126_v7 = vmul.f32 %v1118_v3, %v1118_v3 }
 0x211   : > { %v1127_v13 = vmul.f32 %v1119_v5, %v1119_v5 }
 0x212   : > { %v1128_v10 = vmul.f32 %v1120_v6, %v1120_v6  ;;  %v990_v11 = vpop.f32.mrb[12].mxu1  ;;  %v1133_v12 = vsel %vm691_vm2, %v1126_v7, 0.0 }
 0x213   : > { %v991_v14 = vadd.f32 %v990_v11, %v912_v57  ;;  %v992_v15 = vpop.f32.mrb[13].mxu1  ;;  %v1134_v16 = vadd.f32 %v1133_v12, %v1125_v8 }
 0x214   : > { %v993_v17 = vadd.f32 %v992_v15, %v916_v58  ;;  %v994_v21 = vpop.f32.mrb[14].mxu1  ;;  %v1137_v45 = vsel %vm691_vm2, %v1128_v10, 0.0 }
 0x215   : > { %v1121_v25 = vsub.f32 %v991_v14, %v1987_v51  ;;  %v995_v27 = vadd.f32 %v994_v21, %v912_v57  ;;  %v996_v46 = vpop.f32.mrb[15].mxu1  ;;  %1135 = vadd.xlane.f32.xlu0 %v1134_v16  ;;  %v1138_v26 = vadd.f32 %v1137_v45, %v1127_v13  ;;  %v1105_v21 = vadd.s32 16, %v2041_v53 }
 0x216   : > { %v1122_v28 = vsub.f32 %v993_v17, %v1976_v47  ;;  %v997_v29 = vadd.f32 %v996_v46, %v916_v58  ;;  %v1104_v17 = vadd.s32 8, %v2041_v53  ;;  %v1108_v45 = vstv %s1466_s1  ;;  %s1615_s1 = sshll.u32 %s1710_s26, 4  ;;  %s1616_s1 = int_to_ptr.vmem [resolvable:$false] %s1615_s1 }
 0x217   : > { %v1123_v30 = vsub.f32 %v995_v27, %v1990_v52  ;;  %v1129_v36 = vmul.f32 %v1121_v25, %v1121_v25  ;;  %v1106_v46 = vadd.s32 24, %v2041_v53  ;;  %s1617_s0 = scalar_lea.vmem %s1616_s1, 32  ;;  %p1618_p10 = scmp.lt.s32.totalorder %s2111_s29, %s1616_s1 }
 0x218   : > { %v1130_v31 = vmul.f32 %v1122_v28, %v1122_v28  ;;  %v1124_v32 = vsub.f32 %v997_v29, %v1979_v48  ;;  %v1110_v27 = vadd.s32 %v1108_v45, %v1104_v17  ;;  %v1111_v28 = vadd.s32 %v1108_v45, %v1105_v21  ;;  %p1619_p12 = scmp.lt.s32.totalorder %s1617_s0, %s1611_s19 }
 0x219   : > { %1139 = vadd.xlane.f32.xlu0 %v1138_v26  ;;  %v1131_v39 = vmul.f32 %v1123_v30, %v1123_v30  ;;  %v1109_v26 = vadd.s32 %v1108_v45, %v2041_v53  ;;  %v1112_v30 = vadd.s32 %v1108_v45, %v1106_v46 }
 0x21a   : > { %v1132_v37 = vmul.f32 %v1124_v32, %v1124_v32  ;;  %v1510_v51 = vpop.f32.mrb[16].mxu1  ;;  %v1141_v38 = vsel %vm691_vm2, %v1130_v31, 0.0  ;;  %vm1114_vm7 = vcmp.lt.s32.totalorder %v1110_v27, 64  ;;  %vm1115_vm9 = vcmp.lt.s32.totalorder %v1111_v28, 64  ;;  %p1620_p1 = por %p1619_p12, %p1618_p10 }
 0x21b   : > { %v1079_v40 = vadd.f32 %v1510_v51, %v1459_v35  ;;  %v1070_v41 = vpop.f32.mrb[17].mxu1  ;;  %v1142_v47 = vadd.f32 %v1141_v38, %v1129_v36  ;;  %vm1113_vm8 = vcmp.lt.s32.totalorder %v1109_v26, 64  ;;  %vm1116_vm10 = vcmp.lt.s32.totalorder %v1112_v30, 64 }
 0x21c   : > { %v1071_v42 = vadd.f32 %v1459_v35, %v1070_v41  ;;  %v1511_v43 = vpop.f32.mrb[18].mxu1  ;;  %v1145_v52 = vsel %vm691_vm2, %v1132_v37, 0.0  ;;  %p1621_p2 = pnand %p1620_p1, %p1614_p9 }
 0x21d   : > { %v1082_v44 = vadd.f32 %v1511_v43, %v1459_v35  ;;  %1143 = vadd.xlane.f32.xlu0 %v1142_v47  ;;  %v1073_v48 = vpop.f32.mrb[19].mxu1  ;;  %v1146_v49 = vadd.f32 %v1145_v52, %v1131_v39  ;;  %v1151_v50 = vsub.f32 %v1079_v40, %v1901_v20 }
 0x21e   : > { %v1149_v54 = vsub.f32 %v1071_v42, %v1897_v18  ;;  %v1074_v57 = vadd.f32 %v1459_v35, %v1073_v48 }
 0x21f   : > { %v1159_v55 = vmul.f32 %v1151_v50, %v1151_v50  ;;  %v1152_v56 = vsub.f32 %v1082_v44, %v1910_v22 }
 0x220   : > { %v1157_v59 = vmul.f32 %v1149_v54, %v1149_v54  ;;  %v1150_v1 = vsub.f32 %v1074_v57, %v1899_v19 }
 0x221   : > { %1147 = vadd.xlane.f32.xlu0 %v1146_v49  ;;  %v1171_v58 = vsel %vm780_vm1, %v1159_v55, 0.0  ;;  %v1160_v18 = vmul.f32 %v1152_v56, %v1152_v56 }
 0x222   : > { %1172 = vadd.xlane.f32.xlu1 %v1171_v58  ;;  %v1514_v60 = vpop.f32.mrb[20].mxu1  ;;  %v1165_v20 = vsel %vm780_vm1, %v1157_v59, 0.0  ;;  %v1158_v10 = vmul.f32 %v1150_v1, %v1150_v1 }
 0x223   : > { %v1095_v61 = vadd.f32 %v1514_v60, %v1459_v35  ;;  %v1086_v62 = vpop.f32.mrb[21].mxu1  ;;  %v1174_v8 = vsel %vm780_vm1, %v1160_v18, 0.0 }
 0x224   : > { %v1087_v63 = vadd.f32 %v1459_v35, %v1086_v62  ;;  %v1515_v0 = vpop.f32.mrb[22].mxu1 }
 0x225   : > { %v1089_v2 = vpop.f32.mrb[23].mxu1  ;;  %v1155_v3 = vsub.f32 %v1095_v61, %v1942_v33  ;;  %v1098_v6 = vadd.f32 %v1515_v0, %v1459_v35 }
 0x226   : > { %v1153_v22 = vsub.f32 %v1087_v63, %v1912_v23  ;;  %v1090_v4 = vadd.f32 %v1459_v35, %v1089_v2  ;;  %1166 = vadd.xlane.f32.xlu1 %v1165_v20  ;;  %v1168_v23 = vsel %vm780_vm1, %v1158_v10, 0.0  ;;  %v1229_v10 = vand.u32 127, %v909_v9 }
 0x227   : > { %v1163_v11 = vmul.f32 %v1155_v3, %v1155_v3  ;;  %v1156_v33 = vsub.f32 %v1098_v6, %v1944_v34  ;;  %v1709_v34 = vmov 0.0  }
 0x228   : > { %v1161_v5 = vmul.f32 %v1153_v22, %v1153_v22  ;;  %v1154_v7 = vsub.f32 %v1090_v4, %v1914_v24  ;;  %587 = vst [vmem:[%s2082_s14] sm:$0x1] %v1709_v34  ;;  %vm1233_vm11 = vcmp.eq.s32.totalorder %v1229_v10, 1  ;;  %vm1231_vm12 = vcmp.eq.s32.totalorder %v1229_v10, 0 }
 0x229   : > { %v1183_v13 = vsel %vm780_vm1, %v1163_v11, 0.0  ;;  %v1164_v14 = vmul.f32 %v1156_v33, %v1156_v33  ;;  %vm1236_vm13 = vcmp.eq.s32.totalorder %v1229_v10, 2 }
 0x22a   : > { %1175 = vadd.xlane.f32.xlu1 %v1174_v8  ;;  %v1177_v19 = vsel %vm780_vm1, %v1161_v5, 0.0  ;;  %v1162_v12 = vmul.f32 %v1154_v7, %v1154_v7 }
 0x22b   : > { %1178 = vadd.xlane.f32.xlu0 %v1177_v19  ;;  %v1186_v15 = vsel %vm780_vm1, %v1164_v14, 0.0 }
 0x22c   : > { %v1180_v24 = vsel %vm780_vm1, %v1162_v12, 0.0 }
 0x22e   : > { %1169 = vadd.xlane.f32.xlu1 %v1168_v23 }
 0x22f   : > { %1184 = vadd.xlane.f32.xlu0 %v1183_v13  ;;  %v1230_v9 = vld [vmem:[%s2082_s14] sm:$0x1] }
 0x232   : > { %1181 = vadd.xlane.f32.xlu1 %v1180_v24 }
 0x236   : > { %1187 = vadd.xlane.f32.xlu1 %v1186_v15 }
 0x2a2   : > { %v1136_v16 = vpop.xlane.xlu0 %1135 }
 0x2a3   : > { %v1189_v36 = vsel %vm1113_vm8, %v1136_v16, 0.0 }
 0x2a6   : > { %v1140_v25 = vpop.xlane.xlu0 %1139 }
 0x2a7   : > { %v1190_v31 = vsel %vm1114_vm7, %v1140_v25, 0.0 }
 0x2a8   : > { %v1193_v51 = vadd.f32 %v1190_v31, %v1189_v36 }
 0x2aa   : > { %v1144_v29 = vpop.xlane.xlu0 %1143 }
 0x2ab   : > { %v1191_v37 = vsel %vm1115_vm9, %v1144_v29, 0.0 }
 0x2ac   : > { %v1194_v39 = vadd.f32 %v1193_v51, %v1191_v37 }
 0x2ae   : > { %v1148_v32 = vpop.xlane.xlu0 %1147 }
 0x2af   : > { %v1173_v35 = vpop.xlane.xlu1 %1172  ;;  %v1192_v38 = vsel %vm1116_vm10, %v1148_v32, 0.0 }
 0x2b0   : > { %v1195_v40 = vadd.f32 %v1194_v39, %v1192_v38  ;;  %v1204_v50 = vsel %vm1115_vm9, %v1173_v35, 0.0 }
 0x2b2   : > { %v1196_v47 = vrot.slane %v1195_v40, 4 }
 0x2b3   : > { %v1167_v53 = vpop.xlane.xlu1 %1166 }
 0x2b4   : > { %v1202_v52 = vsel %vm1113_vm8, %v1167_v53, 0.0  ;;  %v1197_v48 = vadd.f32 %v1196_v47, %v1195_v40 }
 0x2b6   : > { %v1198_v60 = vrot.slane %v1197_v48, 2 }
 0x2b7   : > { %v1176_v41 = vpop.xlane.xlu1 %1175 }
 0x2b8   : > { %v1179_v42 = vpop.xlane.xlu0 %1178  ;;  %v1205_v57 = vsel %vm1116_vm10, %v1176_v41, 0.0  ;;  %v1199_v18 = vadd.f32 %v1198_v60, %v1197_v48 }
 0x2b9   : > { %v1215_v58 = vsel %vm1113_vm8, %v1179_v42, 0.0 }
 0x2ba   : > { %v1200_v6 = vrot.slane %v1199_v18, 1 }
 0x2bb   : > { %v1170_v43 = vpop.xlane.xlu1 %1169 }
 0x2bc   : > { %v1203_v44 = vsel %vm1114_vm7, %v1170_v43, 0.0  ;;  %v1185_v55 = vpop.xlane.xlu0 %1184  ;;  %v1201_v33 = vadd.f32 %v1200_v6, %v1199_v18 }
 0x2bd   : > { %v1206_v49 = vadd.f32 %v1203_v44, %v1202_v52  ;;  %v1217_v63 = vsel %vm1115_vm9, %v1185_v55, 0.0 }
 0x2be   : > { %v1232_v14 = vsel %vm1231_vm12, %v1201_v33, 0.0 }
 0x2bf   : > { %v1207_v54 = vadd.f32 %v1206_v49, %v1204_v50  ;;  %v1182_v56 = vpop.xlane.xlu1 %1181 }
 0x2c0   : > { %v1216_v59 = vsel %vm1114_vm7, %v1182_v56, 0.0 }
 0x2c1   : > { %v1208_v61 = vadd.f32 %v1207_v54, %v1205_v57  ;;  %v1219_v62 = vadd.f32 %v1216_v59, %v1215_v58 }
 0x2c3   : > { %v1209_v0 = vrot.slane %v1208_v61, 4  ;;  %v1220_v1 = vadd.f32 %v1219_v62, %v1217_v63  ;;  %v1188_v2 = vpop.xlane.xlu1 %1187 }
 0x2c4   : > { %v1218_v20 = vsel %vm1116_vm10, %v1188_v2, 0.0 }
 0x2c5   : > { %v1210_v3 = vadd.f32 %v1209_v0, %v1208_v61  ;;  %v1221_v22 = vadd.f32 %v1220_v1, %v1218_v20 }
 0x2c7   : > { %v1211_v4 = vrot.slane %v1210_v3, 2  ;;  %v1222_v5 = vrot.slane %v1221_v22, 4 }
 0x2c9   : > { %v1212_v7 = vadd.f32 %v1211_v4, %v1210_v3  ;;  %v1223_v8 = vadd.f32 %v1222_v5, %v1221_v22 }
 0x2cb   : > { %v1213_v19 = vrot.slane %v1212_v7, 1  ;;  %v1224_v11 = vrot.slane %v1223_v8, 2 }
 0x2cd   : > { %v1214_v23 = vadd.f32 %v1213_v19, %v1212_v7  ;;  %v1225_v12 = vadd.f32 %v1224_v11, %v1223_v8 }
 0x2cf   : > { %v1226_v13 = vrot.slane %v1225_v12, 1  ;;  %v1234_v24 = vsel %vm1233_vm11, %v1214_v23, 0.0 }
 0x2d0   : > { %v1235_v34 = vadd.f32 %v1234_v24, %v1232_v14 }
 0x2d1   : > { %v1227_v15 = vadd.f32 %v1226_v13, %v1225_v12 }
 0x2d3   : > { %v1237_v16 = vsel %vm1236_vm13, %v1227_v15, 0.0 }
 0x2d4   : > { %v1238_v17 = vadd.f32 %v1237_v16, %v1235_v34 }
 0x2d6   : > { %v1239_v21 = vadd.f32 %v1238_v17, %v1230_v9 }
 0x2d8   : > { %1240 = vst [vmem:[%s2082_s14] sm:$0x1] %v1239_v21 }
 0x2d9   : > { %1624 = shalt.err (!%p1621_p2)
}
 0x2da   : > { %s1625_s24 = scalar_lea.hbm %s2109_s20, 16  ;;  %s1629_s16 = scalar_lea.hbm %s2194_s30, 32 }
 0x2db   : > { %p1626_p3 = scmp.ne.s32.totalorder %s2109_s20, %s1625_s24  ;;  %p1630_p6 = scmp.lt.u32.totalorder %s2109_s20, %s2194_s30 }
 0x2dc   : > { %p1631_p7 = scmp.lt.u32.totalorder %s1629_s16, %s1625_s24  ;;  %p1633_p9 = scmp.lt.u32.totalorder %s1625_s24, %s2109_s20 }
 0x2dd   : > { %p1627_p4 = pnand %p1626_p3, %p1846_p11 }
 0x2de   : > { %p1632_p8 = por %p1631_p7, %p1630_p6 }
 0x2df   : > { %p1628_p5 = pneg %p1627_p4 }
 0x2e0   : > { %p1634_p10 = por %p1633_p9, %p1632_p8 }
 0x2e2   : > { %p1635_p12 = pnand %p1634_p10, %p1628_p5 }
 0x2e4   : > { %1638 = shalt.err (!%p1635_p12)
}
 0x2e5   : > { %1517 = dma.vmem_to_hbm [thread:$0]  (%p1846_p11), %s2111_s29, 16, %s2109_s20, %s1254_s15  }
 0x2e6 PF: > { %s1306_s0 = sand.u32 1, %s1677_s21   ;;  %p1520_p1 = pnand %p1412_p0, %p1850_p13 }
 0x2e7   : > { %s1307_s19 = scalar_lea.sflag [#allocation4], %s1306_s0 }
 0x2e8   : > { %1672 = dma.done.wait (!%p1520_p1), %s1307_s19, 16  }
 0x2e9   : > { %1674 = vsyncadd (!%p1520_p1), %s1307_s19, 4294967280  ;;  %s26_s28 = sadd.s32 1, %s1705_s28   ;;  %s2195_s26 = sld [smem:[#allocation6_spill]] }
 0x2ea   : > { %p23_p2 = scmp.ge.s32.totalorder %s26_s28, 4   ;;  %s2196_s21 = smov %s1681_s22 }
 0x2eb   : > { %s2197_s22 = smov %s1685_s23  ;;  %s2198_s23 = smov %s1841_s12 }
 0x2ec   : > { %s2199_s24 = smov %s1693_s25  ;;  %s2200_s25 = smov %s1844_s9 }
 0x2ed   : > { %s2201_s27 = smov %s2203_s13  ;;  %25 = sbr.rel (!%p23_p2) target bundleno = 11 (0xb), region = 169 }
 0x2f4   :  { %1311 = vsyncpa [#allocation4], 1 }
 0x2f5   :  { %1313 = vsyncpa [#allocation4 + $0x1], 1 }

</bundles_post_ra>
